<compile_context>
chip_gen: v7x
topology: tpu7x:2x2x1
jax: 0.10.0
libtpu: 0.0.40
codegen_flags: <defaults>
</compile_context>

<pallas_src>
import functools

import jax
import jax.numpy as jnp
from jax.experimental import pallas as pl
from jax.experimental.pallas import tpu as pltpu


def _visual_extractor_kernel(x_ref, w_ref, b_ref, patch_ref, avg_ref, *,
                             n_channels, hw):
    # x_ref:     (1, N, HW, C)    -- all crops of one batch element, channels-last
    # w_ref:     (C, F_pad)       -- 1x1 conv weight (backbone stand-in), lane-padded
    # b_ref:     (1, F_pad)       -- bias, lane-padded
    # patch_ref: (1, HW, F_pad)   -- max over crops of per-position features
    # avg_ref:   (1, 1, F_pad)    -- max over crops of avg-pooled features
    x = x_ref[0]                      # (N, HW, C)
    w = w_ref[...]                    # (C, F_pad)
    b = b_ref[...]                    # (1, F_pad)

    # Backbone stand-in: 1x1 conv as a VPU broadcast-FMA over the tiny channel dim
    # (K = n_channels is far too small to occupy the MXU), then ReLU.
    acc = x[:, :, 0:1] * w[0:1, :][None, :, :]               # (N, HW, F_pad)
    for c in range(1, n_channels):                           # static unroll, C is tiny
        acc = acc + x[:, :, c:c + 1] * w[c:c + 1, :][None, :, :]
    feats = jnp.maximum(acc + b[None, :, :], 0.0)            # (N, HW, F_pad)

    # patch_feats: per-position features, max over crops (vectorized, no slicing).
    patch_ref[0] = jnp.max(feats, axis=0).astype(patch_ref.dtype)      # (HW, F_pad)

    # avg_feats: AvgPool2d(7) per crop == mean over HW (divide by the real hw=49),
    # then max over crops.
    crop_means = jnp.sum(feats, axis=1) * (1.0 / hw)                   # (N, F_pad)
    avg_ref[0] = jnp.max(crop_means, axis=0, keepdims=True).astype(avg_ref.dtype)


def visual_extractor_object(images, w, b):
    """images: (B, N_crops, C, H, W) float32 (NCHW crops, PyTorch convention)."""
    B, N, C, H, W = images.shape
    F = w.shape[1]
    HW = H * W
    F_pad = ((F + 127) // 128) * 128                         # lane-dense feature dim

    # NCHW crops -> channels-last (B, N, HW, C).  allow_input_fusion lets XLA fuse
    # this permute into the pallas_call operand read instead of a separate HBM copy.
    x = jnp.transpose(images, (0, 1, 3, 4, 2)).reshape(B, N, HW, C)
    w_pad = jnp.pad(w, ((0, 0), (0, F_pad - F)))
    b_pad = jnp.pad(b, (0, F_pad - F)).reshape(1, F_pad)

    kernel = functools.partial(_visual_extractor_kernel, n_channels=C, hw=HW)

    flops = 2 * B * N * HW * C * F_pad
    bytes_accessed = 4 * (B * N * HW * C + C * F_pad + F_pad
                          + B * HW * F_pad + B * F_pad)

    patch, avg = pl.pallas_call(
        kernel,
        out_shape=(
            jax.ShapeDtypeStruct((B, HW, F_pad), jnp.float32),
            jax.ShapeDtypeStruct((B, 1, F_pad), jnp.float32),
        ),
        grid_spec=pltpu.PrefetchScalarGridSpec(
            num_scalar_prefetch=0,
            grid=(B,),
            in_specs=[
                pl.BlockSpec((1, N, HW, C), lambda bi: (bi, 0, 0, 0)),
                pl.BlockSpec((C, F_pad), lambda bi: (0, 0)),
                pl.BlockSpec((1, F_pad), lambda bi: (0, 0)),
            ],
            out_specs=[
                pl.BlockSpec((1, HW, F_pad), lambda bi: (bi, 0, 0)),
                pl.BlockSpec((1, 1, F_pad), lambda bi: (bi, 0, 0)),
            ],
        ),
        compiler_params=pltpu.CompilerParams(
            dimension_semantics=("parallel",),
            allow_input_fusion=[True, False, False],
        ),
        cost_estimate=pl.CostEstimate(
            flops=flops, transcendentals=0, bytes_accessed=bytes_accessed),
    )(x, w_pad, b_pad)

    # Slice the lane-padding back off.
    return patch[:, :, :F], avg[:, 0, :F]


def _reference(images, w, b):
    """Pure-JAX reference mirroring the torch forward() semantics."""
    B, N, C, H, W = images.shape
    F = w.shape[1]
    x = jnp.transpose(images, (0, 1, 3, 4, 2))                          # (B, N, H, W, C)
    feats = jnp.maximum(jnp.einsum("bnhwc,cf->bnhwf", x, w) + b, 0.0)   # backbone stand-in
    patch = feats.reshape(B, N, H * W, F)
    avg = jnp.mean(patch, axis=2)                                       # AvgPool2d(7)
    return jnp.max(patch, axis=1), jnp.max(avg, axis=1)                 # max over crops


if __name__ == "__main__":
    B, N, C, H, W, F = 2, 3, 4, 7, 7, 32
    key = jax.random.PRNGKey(0)
    k_img, k_w, k_b = jax.random.split(key, 3)

    images = jax.random.normal(k_img, (B, N, C, H, W), dtype=jnp.float32)
    w = jax.random.normal(k_w, (C, F), dtype=jnp.float32) * 0.1
    b = jax.random.normal(k_b, (F,), dtype=jnp.float32) * 0.1

    fn = jax.jit(visual_extractor_object)
    patch_feats, avg_feats = fn(images, w, b)
    jax.block_until_ready((patch_feats, avg_feats))

    ref_patch, ref_avg = _reference(images, w, b)
    assert patch_feats.shape == (B, H * W, F)
    assert avg_feats.shape == (B, F)
    assert jnp.allclose(patch_feats, ref_patch, atol=1e-5, rtol=1e-5)
    assert jnp.allclose(avg_feats, ref_avg, atol=1e-5, rtol=1e-5)

    print("KERNEL_OK")
</pallas_src>

<mosaic_0001>
module attributes {stable_mosaic.version = 11 : i64} {
  func.func @_visual_extractor_kernel(%arg0: i32, %arg1: memref<1x3x49x4xf32, #tpu.memory_space<vmem>>, %arg2: memref<4x128xf32, #tpu.memory_space<vmem>>, %arg3: memref<1x128xf32, #tpu.memory_space<vmem>>, %arg4: memref<1x49x128xf32, #tpu.memory_space<vmem>>, %arg5: memref<1x1x128xf32, #tpu.memory_space<vmem>>) attributes {dimension_semantics = [#tpu.dimension_semantics<parallel>], iteration_bounds = array<i64: 2>, scalar_prefetch = 0 : i64, scratch_operands = 0 : i64, tpu.core_type = #tpu.core_type<tc>, window_params = [{transform_indices = @transform_0, window_bounds = array<i64: 1, 3, 49, 4>}, {pipeline_mode = #tpu.pipeline_mode<synchronous>, transform_indices = @transform_1, window_bounds = array<i64: 4, 128>}, {pipeline_mode = #tpu.pipeline_mode<synchronous>, transform_indices = @transform_2, window_bounds = array<i64: 1, 128>}, {transform_indices = @transform_3, window_bounds = array<i64: 1, 49, 128>}, {transform_indices = @transform_4, window_bounds = array<i64: 1, 1, 128>}]} {
    %c0 = arith.constant 0 : index
    %c0_0 = arith.constant 0 : index
    %c0_1 = arith.constant 0 : index
    %c0_2 = arith.constant 0 : index
    %0 = vector.load %arg1[%c0, %c0_0, %c0_1, %c0_2] : memref<1x3x49x4xf32, #tpu.memory_space<vmem>>, vector<1x3x49x4xf32>
    %1 = vector.shape_cast %0 : vector<1x3x49x4xf32> to vector<3x49x4xf32>
    %c0_3 = arith.constant 0 : index
    %c0_4 = arith.constant 0 : index
    %2 = vector.load %arg2[%c0_3, %c0_4] : memref<4x128xf32, #tpu.memory_space<vmem>>, vector<4x128xf32>
    %c0_5 = arith.constant 0 : index
    %c0_6 = arith.constant 0 : index
    %3 = vector.load %arg3[%c0_5, %c0_6] : memref<1x128xf32, #tpu.memory_space<vmem>>, vector<1x128xf32>
    %4 = vector.extract_strided_slice %1 {offsets = [0, 0, 0], sizes = [3, 49, 1], strides = [1, 1, 1]} : vector<3x49x4xf32> to vector<3x49x1xf32>
    %5 = vector.extract_strided_slice %2 {offsets = [0, 0], sizes = [1, 128], strides = [1, 1]} : vector<4x128xf32> to vector<1x128xf32>
    %6 = vector.shape_cast %5 : vector<1x128xf32> to vector<1x1x128xf32>
    %7 = vector.broadcast %4 : vector<3x49x1xf32> to vector<3x49x128xf32>
    %8 = vector.broadcast %6 : vector<1x1x128xf32> to vector<3x49x128xf32>
    %9 = arith.mulf %7, %8 : vector<3x49x128xf32>
    %10 = vector.extract_strided_slice %1 {offsets = [0, 0, 1], sizes = [3, 49, 1], strides = [1, 1, 1]} : vector<3x49x4xf32> to vector<3x49x1xf32>
    %11 = vector.extract_strided_slice %2 {offsets = [1, 0], sizes = [1, 128], strides = [1, 1]} : vector<4x128xf32> to vector<1x128xf32>
    %12 = vector.shape_cast %11 : vector<1x128xf32> to vector<1x1x128xf32>
    %13 = vector.broadcast %10 : vector<3x49x1xf32> to vector<3x49x128xf32>
    %14 = vector.broadcast %12 : vector<1x1x128xf32> to vector<3x49x128xf32>
    %15 = arith.mulf %13, %14 : vector<3x49x128xf32>
    %16 = arith.addf %9, %15 : vector<3x49x128xf32>
    %17 = vector.extract_strided_slice %1 {offsets = [0, 0, 2], sizes = [3, 49, 1], strides = [1, 1, 1]} : vector<3x49x4xf32> to vector<3x49x1xf32>
    %18 = vector.extract_strided_slice %2 {offsets = [2, 0], sizes = [1, 128], strides = [1, 1]} : vector<4x128xf32> to vector<1x128xf32>
    %19 = vector.shape_cast %18 : vector<1x128xf32> to vector<1x1x128xf32>
    %20 = vector.broadcast %17 : vector<3x49x1xf32> to vector<3x49x128xf32>
    %21 = vector.broadcast %19 : vector<1x1x128xf32> to vector<3x49x128xf32>
    %22 = arith.mulf %20, %21 : vector<3x49x128xf32>
    %23 = arith.addf %16, %22 : vector<3x49x128xf32>
    %24 = vector.extract_strided_slice %1 {offsets = [0, 0, 3], sizes = [3, 49, 1], strides = [1, 1, 1]} : vector<3x49x4xf32> to vector<3x49x1xf32>
    %25 = vector.extract_strided_slice %2 {offsets = [3, 0], sizes = [1, 128], strides = [1, 1]} : vector<4x128xf32> to vector<1x128xf32>
    %26 = vector.shape_cast %25 : vector<1x128xf32> to vector<1x1x128xf32>
    %27 = vector.broadcast %24 : vector<3x49x1xf32> to vector<3x49x128xf32>
    %28 = vector.broadcast %26 : vector<1x1x128xf32> to vector<3x49x128xf32>
    %29 = arith.mulf %27, %28 : vector<3x49x128xf32>
    %30 = arith.addf %23, %29 : vector<3x49x128xf32>
    %31 = vector.shape_cast %3 : vector<1x128xf32> to vector<1x1x128xf32>
    %32 = vector.broadcast %31 : vector<1x1x128xf32> to vector<3x49x128xf32>
    %33 = arith.addf %30, %32 : vector<3x49x128xf32>
    %cst = arith.constant 0.000000e+00 : f32
    %34 = vector.broadcast %cst : f32 to vector<3x49x128xf32>
    %35 = arith.maximumf %33, %34 : vector<3x49x128xf32>
    %cst_7 = arith.constant dense<0xFF800000> : vector<49x128xf32>
    %36 = vector.multi_reduction <maximumf>, %35, %cst_7 [0] : vector<3x49x128xf32> to vector<49x128xf32>
    %c0_8 = arith.constant 0 : index
    %c0_9 = arith.constant 0 : index
    %c0_10 = arith.constant 0 : index
    %37 = vector.load %arg4[%c0_8, %c0_9, %c0_10] : memref<1x49x128xf32, #tpu.memory_space<vmem>>, vector<1x49x128xf32>
    %38 = vector.shape_cast %37 : vector<1x49x128xf32> to vector<49x128xf32>
    %39 = vector.shape_cast %36 : vector<49x128xf32> to vector<1x49x128xf32>
    tpu.vector_store %arg4[%c0_8, %c0_9, %c0_10], %39 {strides = array<i32>} : memref<1x49x128xf32, #tpu.memory_space<vmem>>, vector<1x49x128xf32>,
    %cst_11 = arith.constant dense<0.000000e+00> : vector<3x128xf32>
    %40 = vector.multi_reduction <add>, %35, %cst_11 [1] : vector<3x49x128xf32> to vector<3x128xf32>
    %cst_12 = arith.constant 0.0204081628 : f32
    %41 = vector.broadcast %cst_12 : f32 to vector<3x128xf32>
    %42 = arith.mulf %40, %41 : vector<3x128xf32>
    %cst_13 = arith.constant dense<0xFF800000> : vector<128xf32>
    %43 = vector.multi_reduction <maximumf>, %42, %cst_13 [0] : vector<3x128xf32> to vector<128xf32>
    %44 = vector.shape_cast %43 : vector<128xf32> to vector<1x128xf32>
    %c0_14 = arith.constant 0 : index
    %c0_15 = arith.constant 0 : index
    %c0_16 = arith.constant 0 : index
    %45 = vector.load %arg5[%c0_14, %c0_15, %c0_16] : memref<1x1x128xf32, #tpu.memory_space<vmem>>, vector<1x1x128xf32>
    %46 = vector.shape_cast %45 : vector<1x1x128xf32> to vector<1x128xf32>
    %47 = vector.shape_cast %44 : vector<1x128xf32> to vector<1x1x128xf32>
    tpu.vector_store %arg5[%c0_14, %c0_15, %c0_16], %47 {strides = array<i32>} : memref<1x1x128xf32, #tpu.memory_space<vmem>>, vector<1x1x128xf32>,
    return
  }
  func.func @transform_0(%arg0: i32) -> (i32, i32, i32, i32) {
    %c0_i32 = arith.constant 0 : i32
    %c0_i32_0 = arith.constant 0 : i32
    %c0_i32_1 = arith.constant 0 : i32
    %c0_i32_2 = arith.constant 0 : i32
    return %arg0, %c0_i32, %c0_i32_0, %c0_i32_1 : i32, i32, i32, i32
  }
  func.func @transform_1(%arg0: i32) -> (i32, i32) {
    %c0_i32 = arith.constant 0 : i32
    %c0_i32_0 = arith.constant 0 : i32
    %c0_i32_1 = arith.constant 0 : i32
    return %c0_i32, %c0_i32_0 : i32, i32
  }
  func.func @transform_2(%arg0: i32) -> (i32, i32) {
    %c0_i32 = arith.constant 0 : i32
    %c0_i32_0 = arith.constant 0 : i32
    %c0_i32_1 = arith.constant 0 : i32
    return %c0_i32, %c0_i32_0 : i32, i32
  }
  func.func @transform_3(%arg0: i32) -> (i32, i32, i32) {
    %c0_i32 = arith.constant 0 : i32
    %c0_i32_0 = arith.constant 0 : i32
    %c0_i32_1 = arith.constant 0 : i32
    return %arg0, %c0_i32, %c0_i32_0 : i32, i32, i32
  }
  func.func @transform_4(%arg0: i32) -> (i32, i32, i32) {
    %c0_i32 = arith.constant 0 : i32
    %c0_i32_0 = arith.constant 0 : i32
    %c0_i32_1 = arith.constant 0 : i32
    return %arg0, %c0_i32, %c0_i32_0 : i32, i32, i32
  }
}

</mosaic_0001>

<bundles_post_ra>
// kernel: visual_extractor_object.1
= control target key start
LH: loop header
LB: loop body
LE: loop exit
PB: predicated region body
PF: predicated region fallthrough
CT: control target
= control target key end

     0   :  { %10 = vsyncpa [#allocation3], 0  ;;  %s1679_s0 = inlined_call_operand.vmem [shape: f32[2,3,49,4], index: 0, kind: input, shape index: {}]   ;;  %s1680_s1 = inlined_call_operand.vmem [shape: f32[4,128], index: 1, kind: input, shape index: {}]   ;;  %s1681_s2 = inlined_call_operand.vmem [shape: f32[1,128], index: 2, kind: input, shape index: {}]   ;;  %s1682_s3 = inlined_call_operand.vmem [shape: f32[2,49,128], index: 3, kind: output, shape index: {0}]   ;;  %s1683_s4 = inlined_call_operand.hbm [shape: f32[2,1,128], index: 4, kind: output, shape index: {1}]  }
   0x1   :  { %12 = vsyncpa [#allocation3 + $0x1], 0  ;;  %s1133_s15 = smov 0   ;;  %s1135_s16 = smov 0  }
   0x2   :  { %s1137_s17 = smov 0   ;;  %s1139_s18 = smov 0  }
   0x3 LB: > { %s1154_s19 = sadd.s32 4294967295, %s1101_s18   ;;  %s970_s20 = sadd.s32 4294967294, %s1101_s18   ;;  %s1101_s18 = sphi %s1139_s18, %s1689_s18   ;;  %s1097_s17 = sphi %s1137_s17, %s1688_s17   ;;  %s1093_s16 = sphi %s1135_s16, %s1687_s16   ;;  %s1089_s15 = sphi %s1133_s15, %s1686_s15  }
   0x4   : > { %s1158_s21 = sadd.s32 1, %s1101_s18   ;;  %s119_s22 = sadd.s32 1, %s1097_s17 }
   0x5   : > { %s116_s23 = ssub.s32 %s1101_s18, %s1158_s21  ;;  %p129_p0 = scmp.ne.s32.totalorder %s1097_s17, %s1093_s16 }
   0x6   : > { %p117_p1 = scmp.eq.s32.totalorder %s116_s23, 0  ;;  %p130_p2 = scmp.eq.s32.totalorder %s1154_s19, 1 }
   0x7   : > { %p135_p3 = scmp.ne.s32.totalorder %s1093_s16, %s1089_s15  ;;  %p136_p4 = scmp.eq.s32.totalorder %s970_s20, 1 }
   0x8   : > { %s1169_s24 = scalar_select %p117_p1, %s1097_s17, %s119_s22  }
   0x9   : > { %p1171_p5 = por %p130_p2, %p129_p0  ;;  %p1175_p6 = por %p136_p4, %p135_p3 }
   0xa   : > { %p973_p7 = scmp.ge.s32.totalorder %s1101_s18, 1  ;;  %p168_p8 = scmp.lt.s32.totalorder %s1101_s18, 3 }
   0xc   : > { %p169_p9 = pnand %p973_p7, %p168_p8 }
   0xd   : > { %p198_p10 = scmp.lt.s32.totalorder (!%p169_p9), %s1154_s19, 1  ;;  %v1103_v0 = vmov (!%p169_p9), 0   ;;  %v1104_v22 = vmov (!%p169_p9), 1   ;;  %v1105_v23 = vmov (!%p169_p9), 2   ;;  %v1106_v24 = vmov (!%p169_p9), 3   ;;  %s196_s14 = sand.u32 (!%p169_p9), 1, %s1093_s16  }
   0xe   : > { %172 = sbr.rel (%p169_p9) target bundleno = 382 (0x17e), region = 32  ;;  %1026 = vset.pattern.permute.xlu1 (!%p169_p9), %v1103_v0  ;;  %1025 = vset.pattern.permute.xlu0 (!%p169_p9), %v1103_v0  ;;  %v336_v39 = vlaneseq (!%p169_p9)  ;;  %v1378_v49 = vld [vmem:[%s1680_s1] sm:$0xf] (!%p169_p9)  ;;  %vm811_vm0 = vcmask (!%p169_p9), 1040384   ;;  %s977_s20 = sshll.u32 (!%p169_p9), %s1154_s19, 4 }
   0xf   : > { %s197_s22 = scalar_lea.vmem (!%p169_p9), [#allocation2], %s196_s14  ;;  %s1637_s29 = scalar_lea.hbm (!%p169_p9), %s1683_s4, %s977_s20 }
  0x10   : > { %v1361_v42 = vshrl.u32 (!%p169_p9), %v336_v39, 7  ;;  %s890_s23 = sshll.u32 (!%p169_p9), %s197_s22, 4  ;;  %s875_s30 = scalar_lea.sflag (!%p169_p9), [#allocation3], %s196_s14  ;;  %s1639_s23 = int_to_ptr.vmem [resolvable:$true] %s890_s23 }
  0x12   : > { %v447_v45 = vsub.s32 (!%p169_p9), 1, %v1361_v42  ;;  %v338_v46 = vsub.s32 (!%p169_p9), 0, %v1361_v42 }
  0x14   : > { %v1381_v50 = vrot.slane (!%p169_p9), %v1378_v49, %v447_v45  ;;  %v1384_v51 = vrot.slane (!%p169_p9), %v1378_v49, %v338_v46 }
  0x15   : > { %s1183_s27 = scalar_select %p198_p10, %s1154_s19, 1 }
  0x16   : > { %s1107_s19 = smov [#allocation2]  }
  0x17   : > { %s980_s28 = smul.u32 168, %s1183_s27  ;;  %s1043_s6 = sshll.u32 %s1107_s19, 4  ;;  %s1044_s6 = int_to_ptr.vmem [resolvable:$false] %s1043_s6 }
  0x18   : > { %s981_s10 = smul.u32 56, %s1183_s27  ;;  %s1045_s7 = scalar_lea.vmem %s1044_s6, 32 }
  0x19   : > { %s1189_s5 = scalar_lea.vmem %s1679_s0, %s980_s28  ;;  %p1046_p0 = scmp.lt.s32.totalorder %s1639_s23, %s1044_s6 }
  0x1a   : > { %v1192_v1 = vld [vmem:[%s1189_s5 + $0x10] sm:$0xff]  ;;  %v1195_v2 = vld [vmem:[%s1189_s5] sm:$0xff]  ;;  %v1200_v3 = vld [vmem:[%s1189_s5 + $0x18] sm:$0xff]  ;;  %s1571_s13 = scalar_lea.vmem %s1682_s3, %s981_s10 }
  0x1b   : > { %243 = vperm.xlu1 %1026, %v1192_v1   ;;  %233 = vperm.xlu0 %1025, %v1195_v2   ;;  %v1203_v4 = vld [vmem:[%s1189_s5 + $0x8] sm:$0xff]  ;;  %v1211_v6 = vld [vmem:[%s1189_s5 + $0x20] sm:$0xff]  ;;  %v1216_v7 = vld [vmem:[%s1189_s5 + $0x38] sm:$0xff] }
  0x1c   : > { %v1208_v5 = vld [vmem:[%s1189_s5 + $0x28] sm:$0xff]  ;;  %v1219_v8 = vld [vmem:[%s1189_s5 + $0x30] sm:$0x1]  ;;  %v1227_v10 = vld [vmem:[%s1189_s5 + $0x40] sm:$0xff] }
  0x1d   : > { %v1224_v9 = vld [vmem:[%s1189_s5 + $0x48] sm:$0xff]  ;;  %v1232_v11 = vld [vmem:[%s1189_s5 + $0x58] sm:$0xff]  ;;  %v1235_v12 = vld [vmem:[%s1189_s5 + $0x50] sm:$0xff] }
  0x1e   : > { %v1240_v13 = vld [vmem:[%s1189_s5 + $0x68] sm:$0x1]  ;;  %v1243_v14 = vld [vmem:[%s1189_s5 + $0x60] sm:$0xff]  ;;  %v1248_v15 = vld [vmem:[%s1189_s5 + $0x78] sm:$0xff] }
  0x1f   : > { %248 = vperm.xlu1 %1026, %v1200_v3   ;;  %238 = vperm.xlu0 %1025, %v1203_v4   ;;  %v1251_v16 = vld [vmem:[%s1189_s5 + $0x70] sm:$0xff]  ;;  %v1256_v17 = vld [vmem:[%s1189_s5 + $0x88] sm:$0xff]  ;;  %v1259_v18 = vld [vmem:[%s1189_s5 + $0x80] sm:$0xff] }
  0x20   : > { %v1264_v19 = vld [vmem:[%s1189_s5 + $0x98] sm:$0xff]  ;;  %v1267_v20 = vld [vmem:[%s1189_s5 + $0x90] sm:$0xff]  ;;  %v1272_v21 = vld [vmem:[%s1189_s5 + $0xa0] sm:$0x1]  ;;  %s1039_s5 = scalar_lea.vmem %s1639_s23, 16 }
  0x21   : > { %p1040_p11 = scmp.ne.s32.totalorder %s1639_s23, %s1039_s5  ;;  %p1047_p1 = scmp.lt.s32.totalorder %s1045_s7, %s1039_s5 }
  0x23   : > { %258 = vperm.xlu1 %1026, %v1208_v5   ;;  %253 = vperm.xlu0 %1025, %v1211_v6   ;;  %p1041_p12 = pnand %p1040_p11, %p1171_p5  ;;  %p1048_p2 = por %p1047_p1, %p1046_p0 }
  0x25   : > { %p1042_p13 = pneg %p1041_p12 }
  0x27   : > { %268 = vperm.xlu1 %1026, %v1216_v7   ;;  %263 = vperm.xlu0 %1025, %v1219_v8   ;;  %p1049_p3 = pnand %p1048_p2, %p1042_p13 }
  0x2b   : > { %278 = vperm.xlu1 %1026, %v1224_v9   ;;  %273 = vperm.xlu0 %1025, %v1227_v10  }
  0x2f   : > { %288 = vperm.xlu1 %1026, %v1232_v11   ;;  %283 = vperm.xlu0 %1025, %v1235_v12  }
  0x33   : > { %298 = vperm.xlu1 %1026, %v1240_v13   ;;  %293 = vperm.xlu0 %1025, %v1243_v14  }
  0x37   : > { %308 = vperm.xlu1 %1026, %v1248_v15   ;;  %303 = vperm.xlu0 %1025, %v1251_v16  }
  0x3b   : > { %318 = vperm.xlu1 %1026, %v1256_v17   ;;  %313 = vperm.xlu0 %1025, %v1259_v18  }
  0x3f   : > { %328 = vperm.xlu1 %1026, %v1264_v19   ;;  %323 = vperm.xlu0 %1025, %v1267_v20  }
  0x43   : > { %1027 = vset.pattern.permute.xlu1 %v1104_v22  ;;  %333 = vperm.xlu0 %1025, %v1272_v21  }
  0x44   : > { %362 = vperm.xlu1 %1027, %v1195_v2  }
  0x47   : > { %1028 = vset.pattern.permute.xlu0 %v1104_v22 }
  0x48   : > { %370 = vperm.xlu1 %1027, %v1192_v1   ;;  %366 = vperm.xlu0 %1028, %v1203_v4  }
  0x4c   : > { %374 = vperm.xlu1 %1027, %v1200_v3   ;;  %378 = vperm.xlu0 %1028, %v1211_v6  }
  0x50   : > { %382 = vperm.xlu1 %1027, %v1208_v5   ;;  %386 = vperm.xlu0 %1028, %v1219_v8  }
  0x54   : > { %390 = vperm.xlu1 %1027, %v1216_v7   ;;  %394 = vperm.xlu0 %1028, %v1227_v10  }
  0x58   : > { %398 = vperm.xlu1 %1027, %v1224_v9   ;;  %402 = vperm.xlu0 %1028, %v1235_v12  }
  0x5c   : > { %406 = vperm.xlu1 %1027, %v1232_v11   ;;  %410 = vperm.xlu0 %1028, %v1243_v14  }
  0x60   : > { %414 = vperm.xlu1 %1027, %v1240_v13   ;;  %418 = vperm.xlu0 %1028, %v1251_v16  }
  0x64   : > { %422 = vperm.xlu1 %1027, %v1248_v15   ;;  %426 = vperm.xlu0 %1028, %v1259_v18  }
  0x68   : > { %430 = vperm.xlu1 %1027, %v1256_v17   ;;  %434 = vperm.xlu0 %1028, %v1267_v20  }
  0x6c   : > { %438 = vperm.xlu1 %1027, %v1264_v19   ;;  %442 = vperm.xlu0 %1028, %v1272_v21  }
  0x70   : > { %1029 = vset.pattern.permute.xlu1 %v1105_v23  ;;  %1030 = vset.pattern.permute.xlu0 %v1105_v23 }
  0x71   : > { %492 = vperm.xlu1 %1029, %v1195_v2   ;;  %496 = vperm.xlu0 %1030, %v1203_v4  }
  0x75   : > { %500 = vperm.xlu1 %1029, %v1192_v1   ;;  %508 = vperm.xlu0 %1030, %v1211_v6  }
  0x79   : > { %504 = vperm.xlu1 %1029, %v1200_v3   ;;  %516 = vperm.xlu0 %1030, %v1219_v8  }
  0x7d   : > { %512 = vperm.xlu1 %1029, %v1208_v5   ;;  %524 = vperm.xlu0 %1030, %v1227_v10  }
  0x81   : > { %520 = vperm.xlu1 %1029, %v1216_v7   ;;  %532 = vperm.xlu0 %1030, %v1235_v12  }
  0x85   : > { %528 = vperm.xlu1 %1029, %v1224_v9   ;;  %540 = vperm.xlu0 %1030, %v1243_v14  }
  0x89   : > { %536 = vperm.xlu1 %1029, %v1232_v11   ;;  %548 = vperm.xlu0 %1030, %v1251_v16  }
  0x8d   : > { %544 = vperm.xlu1 %1029, %v1240_v13   ;;  %560 = vperm.xlu0 %1030, %v1256_v17  }
  0x91   : > { %552 = vperm.xlu1 %1029, %v1248_v15   ;;  %568 = vperm.xlu0 %1030, %v1264_v19  }
  0x95   : > { %1031 = vset.pattern.permute.xlu1 %v1106_v24  ;;  %1036 = vset.pattern.permute.xlu0 %v1106_v24 }
  0x96   : > { %626 = vperm.xlu1 %1031, %v1203_v4   ;;  %622 = vperm.xlu0 %1036, %v1195_v2  }
  0x9a   : > { %v244_v25 = vpop.permute.xlu1 %243  ;;  %650 = vperm.xlu1 %1031, %v1216_v7   ;;  %654 = vperm.xlu0 %1036, %v1227_v10   ;;  %v234_v26 = vpop.permute.xlu0 %233 }
  0x9b   : > { %v340_v54 = vmul.f32 %v1384_v51, %v234_v26  ;;  %v342_v59 = vmul.f32 %v1384_v51, %v244_v25 }
  0x9e   : > { %v1322_v27 = vpop.permute.xlu1 %248  ;;  %1032 = vset.pattern.permute.xlu1 %v1105_v23  ;;  %630 = vperm.xlu0 %1036, %v1192_v1   ;;  %v239_v28 = vpop.permute.xlu0 %238 }
  0x9f   : > { %556 = vperm.xlu1 %1032, %v1259_v18   ;;  %v341_v60 = vmul.f32 %v1384_v51, %v239_v28 }
  0xa2   : > { %v1327_v29 = vpop.permute.xlu1 %258  ;;  %678 = vperm.xlu0 %1036, %v1251_v16   ;;  %v254_v30 = vpop.permute.xlu0 %253 }
  0xa3   : > { %1033 = vset.pattern.permute.xlu1 %v1106_v24  ;;  %v344_v4 = vmul.f32 %v1384_v51, %v254_v30 }
  0xa4   : > { %658 = vperm.xlu1 %1033, %v1224_v9  }
  0xa6   : > { %v1332_v31 = vpop.permute.xlu1 %268  ;;  %686 = vperm.xlu0 %1036, %v1259_v18   ;;  %v264_v32 = vpop.permute.xlu0 %263 }
  0xa8   : > { %682 = vperm.xlu1 %1033, %v1248_v15  }
  0xaa   : > { %v1336_v33 = vpop.permute.xlu1 %278  ;;  %666 = vperm.xlu0 %1036, %v1232_v11   ;;  %v1339_v34 = vpop.permute.xlu0 %273 }
  0xab   : > { %v348_v22 = vmul.f32 %v1384_v51, %v1339_v34  ;;  %v349_v28 = vmul.f32 %v1384_v51, %v1336_v33 }
  0xac   : > { %634 = vperm.xlu1 %1033, %v1200_v3   ;;  %v343_v3 = vmul.f32 %v1384_v51, %v1322_v27 }
  0xae   : > { %v1342_v35 = vpop.permute.xlu1 %288  ;;  %694 = vperm.xlu0 %1036, %v1267_v20   ;;  %v1345_v36 = vpop.permute.xlu0 %283 }
  0xaf   : > { %v351_v45 = vmul.f32 %v1384_v51, %v1342_v35 }
  0xb0   : > { %662 = vperm.xlu1 %1033, %v1235_v12   ;;  %v345_v12 = vmul.f32 %v1384_v51, %v1327_v29  ;;  %v350_v29 = vmul.f32 %v1384_v51, %v1345_v36 }
  0xb2   : > { %v1348_v37 = vpop.permute.xlu1 %298  ;;  %674 = vperm.xlu0 %1036, %v1240_v13   ;;  %v1351_v38 = vpop.permute.xlu0 %293  ;;  %v346_v13 = vmul.f32 %v1384_v51, %v264_v32 }
  0xb3   : > { %v352_v46 = vmul.f32 %v1384_v51, %v1351_v38 }
  0xb4   : > { %1034 = vset.pattern.permute.xlu1 %v1105_v23 }
  0xb5   : > { %564 = vperm.xlu1 %1034, %v1267_v20  }
  0xb6   : > { %v1355_v40 = vpop.permute.xlu1 %308  ;;  %702 = vperm.xlu0 %1036, %v1272_v21   ;;  %v1358_v41 = vpop.permute.xlu0 %303 }
  0xb9   : > { %1035 = vset.pattern.permute.xlu1 %v1106_v24 }
  0xba   : > { %v1363_v43 = vpop.permute.xlu1 %318  ;;  %638 = vperm.xlu1 %1035, %v1211_v6   ;;  %v1366_v44 = vpop.permute.xlu0 %313 }
  0xbe   : > { %v1370_v47 = vpop.permute.xlu1 %328  ;;  %690 = vperm.xlu1 %1035, %v1256_v17   ;;  %v1373_v48 = vpop.permute.xlu0 %323 }
  0xc2   : > { %642 = vperm.xlu1 %1035, %v1208_v5   ;;  %v1387_v52 = vpop.permute.xlu0 %333 }
  0xc3   : > { %v363_v53 = vpop.permute.xlu1 %362 }
  0xc4   : > { %v449_v55 = vmul.f32 %v1381_v50, %v363_v53 }
  0xc6   : > { %v1391_v56 = vadd.f32 %v449_v55, %v340_v54  ;;  %670 = vperm.xlu1 %1035, %v1243_v14  }
  0xc7   : > { %v371_v57 = vpop.permute.xlu1 %370  ;;  %v367_v58 = vpop.permute.xlu0 %366 }
  0xc8   : > { %v451_v61 = vmul.f32 %v1381_v50, %v371_v57  ;;  %v450_v62 = vmul.f32 %v1381_v50, %v367_v58  ;;  %v353_v58 = vmul.f32 %v1384_v51, %v1348_v37 }
  0xca   : > { %v1398_v63 = vadd.f32 %v451_v61, %v342_v59  ;;  %v1400_v0 = vadd.f32 %v450_v62, %v341_v60  ;;  %1037 = vset.pattern.permute.xlu1 %v1105_v23 }
  0xcb   : > { %572 = vperm.xlu1 %1037, %v1272_v21   ;;  %v375_v1 = vpop.permute.xlu1 %374  ;;  %v379_v2 = vpop.permute.xlu0 %378  ;;  %v347_v21 = vmul.f32 %v1384_v51, %v1332_v31 }
  0xcc   : > { %v452_v5 = vmul.f32 %v1381_v50, %v375_v1  ;;  %v453_v6 = vmul.f32 %v1381_v50, %v379_v2  ;;  %v357_v1 = vmul.f32 %v1384_v51, %v1363_v43  ;;  %v358_v2 = vmul.f32 %v1384_v51, %v1373_v48 }
  0xce   : > { %v1409_v7 = vadd.f32 %v452_v5, %v343_v3  ;;  %v1411_v9 = vadd.f32 %v453_v6, %v344_v4 }
  0xcf   : > { %1038 = vset.pattern.permute.xlu1 %v1106_v24  ;;  %v383_v10 = vpop.permute.xlu1 %382  ;;  %v387_v11 = vpop.permute.xlu0 %386 }
  0xd0   : > { %v454_v14 = vmul.f32 %v1381_v50, %v383_v10  ;;  %v455_v15 = vmul.f32 %v1381_v50, %v387_v11  ;;  %646 = vperm.xlu1 %1038, %v1219_v8   ;;  %v359_v11 = vmul.f32 %v1384_v51, %v1370_v47 }
  0xd2   : > { %v1420_v16 = vadd.f32 %v454_v14, %v345_v12  ;;  %v476_v17 = vadd.f32 %v455_v15, %v346_v13  ;;  %v360_v12 = vmul.f32 %v1384_v51, %v1387_v52  ;;  %v577_v15 = vsub.s32 2, %v1361_v42 }
  0xd3   : > { %v391_v18 = vpop.permute.xlu1 %390  ;;  %v395_v20 = vpop.permute.xlu0 %394 }
  0xd4   : > { %v456_v23 = vmul.f32 %v1381_v50, %v391_v18  ;;  %v457_v24 = vmul.f32 %v1381_v50, %v395_v20  ;;  %698 = vperm.xlu1 %1038, %v1264_v19  }
  0xd6   : > { %v1429_v25 = vadd.f32 %v456_v23, %v347_v21  ;;  %v1431_v8 = vadd.f32 %v457_v24, %v348_v22  ;;  %v1482_v21 = vrot.slane %v1378_v49, %v577_v15 }
  0xd7   : > { %v399_v26 = vpop.permute.xlu1 %398  ;;  %v403_v27 = vpop.permute.xlu0 %402 }
  0xd8   : > { %v458_v30 = vmul.f32 %v1381_v50, %v399_v26  ;;  %v459_v31 = vmul.f32 %v1381_v50, %v403_v27 }
  0xda   : > { %v1439_v32 = vadd.f32 %v458_v30, %v349_v28  ;;  %v1441_v34 = vadd.f32 %v459_v31, %v350_v29 }
  0xdb   : > { %v407_v19 = vpop.permute.xlu1 %406  ;;  %v411_v39 = vpop.permute.xlu0 %410 }
  0xdc   : > { %v460_v33 = vmul.f32 %v1381_v50, %v407_v19  ;;  %v461_v36 = vmul.f32 %v1381_v50, %v411_v39 }
  0xde   : > { %v1449_v53 = vadd.f32 %v460_v33, %v351_v45  ;;  %v482_v54 = vadd.f32 %v461_v36, %v352_v46 }
  0xdf   : > { %v415_v55 = vpop.permute.xlu1 %414  ;;  %v1451_v57 = vpop.permute.xlu0 %418 }
  0xe0   : > { %v462_v59 = vmul.f32 %v1381_v50, %v415_v55 }
  0xe2   : > { %v1456_v60 = vadd.f32 %v462_v59, %v353_v58 }
  0xe3   : > { %v1458_v35 = vpop.permute.xlu1 %422  ;;  %v1460_v38 = vpop.permute.xlu0 %426 }
  0xe7   : > { %v431_v61 = vpop.permute.xlu1 %430  ;;  %v435_v62 = vpop.permute.xlu0 %434 }
  0xe8   : > { %v466_v3 = vmul.f32 %v1381_v50, %v431_v61  ;;  %v467_v37 = vmul.f32 %v1381_v50, %v435_v62  ;;  %v707_v61 = vsub.s32 3, %v1361_v42 }
  0xea   : > { %v1468_v4 = vadd.f32 %v466_v3, %v357_v1  ;;  %v1470_v5 = vadd.f32 %v467_v37, %v358_v2 }
  0xeb   : > { %v439_v6 = vpop.permute.xlu1 %438  ;;  %v443_v10 = vpop.permute.xlu0 %442 }
  0xec   : > { %v468_v43 = vmul.f32 %v1381_v50, %v439_v6  ;;  %v469_v48 = vmul.f32 %v1381_v50, %v443_v10 }
  0xee   : > { %v489_v13 = vadd.f32 %v468_v43, %v359_v11  ;;  %v1478_v14 = vadd.f32 %v469_v48, %v360_v12 }
  0xf0   : > { %v493_v18 = vpop.permute.xlu1 %492  ;;  %v497_v20 = vpop.permute.xlu0 %496 }
  0xf1   : > { %v579_v2 = vmul.f32 %v1482_v21, %v493_v18  ;;  %v580_v3 = vmul.f32 %v1482_v21, %v497_v20 }
  0xf3   : > { %v600_v42 = vadd.f32 %v579_v2, %v1391_v56  ;;  %v601_v43 = vadd.f32 %v580_v3, %v1400_v0 }
  0xf4   : > { %v501_v22 = vpop.permute.xlu1 %500  ;;  %v509_v23 = vpop.permute.xlu0 %508 }
  0xf5   : > { %v583_v47 = vmul.f32 %v1482_v21, %v509_v23  ;;  %v581_v20 = vmul.f32 %v1482_v21, %v501_v22  ;;  %v463_v22 = vmul.f32 %v1381_v50, %v1451_v57 }
  0xf7   : > { %v1486_v52 = vadd.f32 %v583_v47, %v1411_v9 }
  0xf8   : > { %v1488_v24 = vpop.permute.xlu1 %504  ;;  %v517_v26 = vpop.permute.xlu0 %516 }
  0xf9   : > { %v585_v27 = vmul.f32 %v1482_v21, %v517_v26 }
  0xfb   : > { %v1491_v28 = vadd.f32 %v585_v27, %v476_v17 }
  0xfc   : > { %v513_v29 = vpop.permute.xlu1 %512  ;;  %v525_v30 = vpop.permute.xlu0 %524 }
  0xfd   : > { %v584_v31 = vmul.f32 %v1482_v21, %v513_v29  ;;  %v587_v6 = vmul.f32 %v1482_v21, %v525_v30 }
  0xff   : > { %v1495_v19 = vadd.f32 %v584_v31, %v1420_v16  ;;  %v608_v23 = vadd.f32 %v587_v6, %v1431_v8  ;;  %v602_v8 = vadd.f32 %v581_v20, %v1398_v63  ;;  %v354_v6 = vmul.f32 %v1384_v51, %v1358_v41 }
 0x100   : > { %v521_v39 = vpop.permute.xlu1 %520  ;;  %v1497_v45 = vpop.permute.xlu0 %532 }
 0x101   : > { %v586_v10 = vmul.f32 %v1482_v21, %v521_v39 }
 0x103   : > { %v607_v47 = vadd.f32 %v586_v10, %v1429_v25  ;;  %v465_v10 = vmul.f32 %v1381_v50, %v1460_v38 }
 0x104   : > { %v529_v46 = vpop.permute.xlu1 %528  ;;  %v541_v9 = vpop.permute.xlu0 %540 }
 0x105   : > { %v591_v33 = vmul.f32 %v1482_v21, %v541_v9  ;;  %v588_v57 = vmul.f32 %v1482_v21, %v529_v46  ;;  %v355_v46 = vmul.f32 %v1384_v51, %v1355_v40 }
 0x107   : > { %v1500_v36 = vadd.f32 %v591_v33, %v482_v54  ;;  %v1513_v54 = vrot.slane %v1378_v49, %v707_v61  ;;  %v1526_v49 = vld [vmem:[%s1681_s2] ss:$0 sm:$0xff] }
 0x108   : > { %v1502_v55 = vpop.permute.xlu1 %536  ;;  %v549_v17 = vpop.permute.xlu0 %548 }
 0x10c   : > { %v1504_v58 = vpop.permute.xlu1 %544  ;;  %v1506_v59 = vpop.permute.xlu0 %560 }
 0x110   : > { %v553_v16 = vpop.permute.xlu1 %552  ;;  %v569_v62 = vpop.permute.xlu0 %568 }
 0x111   : > { %v598_v1 = vmul.f32 %v1482_v21, %v569_v62 }
 0x113   : > { %v1515_v37 = vadd.f32 %v598_v1, %v489_v13 }
 0x115   : > { %v627_v11 = vpop.permute.xlu1 %626  ;;  %v623_v12 = vpop.permute.xlu0 %622 }
 0x116   : > { %v710_v48 = vmul.f32 %v1513_v54, %v627_v11  ;;  %v709_v15 = vmul.f32 %v1513_v54, %v623_v12  ;;  %v593_v11 = vmul.f32 %v1482_v21, %v549_v17 }
 0x118   : > { %v731_v13 = vadd.f32 %v710_v48, %v601_v43  ;;  %v730_v18 = vadd.f32 %v709_v15, %v600_v42  ;;  %v356_v43 = vmul.f32 %v1384_v51, %v1366_v44  ;;  %v484_v48 = vadd.f32 %v463_v22, %v354_v6 }
 0x119   : > { %v651_v56 = vpop.permute.xlu1 %650  ;;  %v655_v26 = vpop.permute.xlu0 %654  ;;  %v464_v15 = vmul.f32 %v1381_v50, %v1458_v35  ;;  %v594_v50 = vmul.f32 %v1482_v21, %v553_v16 }
 0x11a   : > { %v758_v0 = vadd.f32 %v1526_v49, %v731_v13  ;;  %v757_v27 = vadd.f32 %v1526_v49, %v730_v18  ;;  %v716_v29 = vmul.f32 %v1513_v54, %v651_v56  ;;  %v717_v30 = vmul.f32 %v1513_v54, %v655_v26 }
 0x11b   : > { %v609_v26 = vadd.f32 %v588_v57, %v1439_v32 }
 0x11c   : > { %v779_v31 = vmax.f32 %v758_v0, 0.0  ;;  %v778_v39 = vmax.f32 %v757_v27, 0.0  ;;  %v737_v9 = vadd.f32 %v716_v29, %v607_v47  ;;  %v738_v33 = vadd.f32 %v717_v30, %v608_v23 }
 0x11d   : > { %v631_v25 = vpop.permute.xlu0 %630  ;;  %v486_v23 = vadd.f32 %v465_v10, %v356_v43  ;;  %v614_v47 = vadd.f32 %v593_v11, %v484_v48  ;;  %v485_v27 = vadd.f32 %v464_v15, %v355_v46  ;;  %v589_v10 = vmul.f32 %v1482_v21, %v1497_v45 }
 0x11e   : > { %v824_v61 = vadd.f32 %v779_v31, %v778_v39  ;;  %v764_v62 = vadd.f32 %v1526_v49, %v737_v9  ;;  %v765_v1 = vadd.f32 %v1526_v49, %v738_v33  ;;  %v711_v2 = vmul.f32 %v1513_v54, %v631_v25  ;;  %v557_v3 = vpop.permute.xlu1 %556 }
 0x11f   : > { %v595_v13 = vmul.f32 %v1482_v21, %v557_v3  ;;  %v615_v22 = vadd.f32 %v594_v50, %v485_v27  ;;  %v582_v25 = vmul.f32 %v1482_v21, %v1488_v24 }
 0x120   : > { %v785_v63 = vmax.f32 %v764_v62, 0.0  ;;  %v786_v12 = vmax.f32 %v765_v1, 0.0  ;;  %v732_v42 = vadd.f32 %v711_v2, %v602_v8 }
 0x121   : > { %v679_v41 = vpop.permute.xlu0 %678  ;;  %v603_v43 = vadd.f32 %v582_v25, %v1409_v7  ;;  %v592_v25 = vmul.f32 %v1482_v21, %v1504_v58 }
 0x122   : > { %v799_v18 = vmax.f32 %v778_v39, %v785_v63  ;;  %v801_v20 = vmax.f32 %v779_v31, %v786_v12  ;;  %v837_v38 = vadd.f32 %v786_v12, %v785_v63  ;;  %v759_v17 = vadd.f32 %v1526_v49, %v732_v42 }
 0x123   : > { %v723_v44 = vmul.f32 %v1513_v54, %v679_v41  ;;  %v659_v56 = vpop.permute.xlu1 %658  ;;  %v616_v39 = vadd.f32 %v595_v13, %v486_v23  ;;  %v610_v41 = vadd.f32 %v589_v10, %v1441_v34  ;;  %v613_v10 = vadd.f32 %v592_v25, %v1456_v60 }
 0x124   : > { %v780_v35 = vmax.f32 %v759_v17, 0.0  ;;  %v718_v0 = vmul.f32 %v1513_v54, %v659_v56 }
 0x125   : > { %v744_v29 = vadd.f32 %v723_v44, %v614_v47  ;;  %v687_v30 = vpop.permute.xlu0 %686 }
 0x126   : > { %v825_v31 = vadd.f32 %v824_v61, %v780_v35  ;;  %v739_v9 = vadd.f32 %v718_v0, %v609_v26  ;;  %v725_v40 = vmul.f32 %v1513_v54, %v687_v30  ;;  %v590_v61 = vmul.f32 %v1482_v21, %v1502_v55 }
 0x127   : > { %v771_v51 = vadd.f32 %v1526_v49, %v744_v29  ;;  %v683_v33 = vpop.permute.xlu1 %682 }
 0x128   : > { %v766_v32 = vadd.f32 %v1526_v49, %v739_v9  ;;  %v746_v8 = vadd.f32 %v725_v40, %v616_v39  ;;  %v724_v16 = vmul.f32 %v1513_v54, %v683_v33  ;;  %v611_v15 = vadd.f32 %v590_v61, %v1449_v53 }
 0x129   : > { %v792_v62 = vmax.f32 %v771_v51, 0.0  ;;  %v667_v1 = vpop.permute.xlu0 %666 }
 0x12a   : > { %v787_v2 = vmax.f32 %v766_v32, 0.0  ;;  %v773_v3 = vadd.f32 %v1526_v49, %v746_v8  ;;  %v745_v6 = vadd.f32 %v724_v16, %v615_v22  ;;  %v720_v24 = vmul.f32 %v1513_v54, %v667_v1 }
 0x12b   : > { %v800_v11 = vmax.f32 %v799_v18, %v792_v62  ;;  %v635_v57 = vpop.permute.xlu1 %634  ;;  %v596_v22 = vmul.f32 %v1482_v21, %v1506_v59 }
 0x12c   : > { %v803_v63 = vmax.f32 %v780_v35, %v787_v2  ;;  %v838_v55 = vadd.f32 %v837_v38, %v787_v2  ;;  %v794_v12 = vmax.f32 %v773_v3, 0.0  ;;  %v772_v42 = vadd.f32 %v1526_v49, %v745_v6 }
 0x12d   : > { %817 = vst [vmem:[%s1571_s13] sm:$0xff] %v800_v11  ;;  %v712_v48 = vmul.f32 %v1513_v54, %v635_v57  ;;  %v741_v23 = vadd.f32 %v720_v24, %v611_v15  ;;  %v695_v27 = vpop.permute.xlu0 %694  ;;  %v617_v1 = vadd.f32 %v596_v22, %v1468_v4 }
 0x12e   : > { %v804_v13 = vmax.f32 %v803_v63, %v794_v12  ;;  %v793_v45 = vmax.f32 %v772_v42, 0.0  ;;  %v727_v29 = vmul.f32 %v1513_v54, %v695_v27 }
 0x12f   : > { %v733_v18 = vadd.f32 %v712_v48, %v603_v43  ;;  %v663_v17 = vpop.permute.xlu1 %662  ;;  %v768_v53 = vadd.f32 %v1526_v49, %v741_v23 }
 0x130   : > { %819 = vst [vmem:[%s1571_s13 + $0x10] sm:$0xff] %v804_v13  ;;  %v802_v46 = vmax.f32 %v801_v20, %v793_v45  ;;  %v850_v38 = vadd.f32 %v793_v45, %v792_v62  ;;  %v719_v47 = vmul.f32 %v1513_v54, %v663_v17 }
 0x131   : > { %v760_v44 = vadd.f32 %v1526_v49, %v733_v18  ;;  %v789_v39 = vmax.f32 %v768_v53, 0.0 }
 0x132   : > { %818 = vst [vmem:[%s1571_s13 + $0x8] sm:$0xff] %v802_v46  ;;  %v740_v7 = vadd.f32 %v719_v47, %v610_v41  ;;  %v851_v56 = vadd.f32 %v850_v38, %v794_v12 }
 0x133   : > { %v781_v26 = vmax.f32 %v760_v44, 0.0 }
 0x134   : > { %v767_v50 = vadd.f32 %v1526_v49, %v740_v7  ;;  %v565_v35 = vpop.permute.xlu1 %564 }
 0x135   : > { %v826_v34 = vadd.f32 %v825_v31, %v781_v26  ;;  %v597_v0 = vmul.f32 %v1482_v21, %v565_v35  ;;  %v675_v31 = vpop.permute.xlu0 %674 }
 0x136   : > { %v788_v20 = vmax.f32 %v767_v50, 0.0  ;;  %v722_v59 = vmul.f32 %v1513_v54, %v675_v31 }
 0x137   : > { %v618_v30 = vadd.f32 %v597_v0, %v1470_v5 }
 0x138   : > { %v805_v9 = vmax.f32 %v781_v26, %v788_v20  ;;  %v839_v40 = vadd.f32 %v838_v55, %v788_v20  ;;  %v743_v63 = vadd.f32 %v722_v59, %v613_v10 }
 0x139   : > { %v748_v51 = vadd.f32 %v727_v29, %v618_v30  ;;  %v639_v33 = vpop.permute.xlu1 %638  ;;  %v703_v46 = vpop.permute.xlu0 %702 }
 0x13a   : > { %v713_v32 = vmul.f32 %v1513_v54, %v639_v33  ;;  %v840_v8 = vadd.f32 %v839_v40, %v789_v39  ;;  %v770_v45 = vadd.f32 %v1526_v49, %v743_v63 }
 0x13b   : > { %v775_v62 = vadd.f32 %v1526_v49, %v748_v51 }
 0x13c   : > { %v734_v16 = vadd.f32 %v713_v32, %v1486_v52  ;;  %v791_v47 = vmax.f32 %v770_v45, 0.0 }
 0x13d   : > { %v691_v5 = vpop.permute.xlu1 %690  ;;  %v796_v52 = vmax.f32 %v775_v62, 0.0 }
 0x13e   : > { %v761_v61 = vadd.f32 %v1526_v49, %v734_v16  ;;  %v726_v2 = vmul.f32 %v1513_v54, %v691_v5  ;;  %v842_v35 = vsel %vm811_vm0, %v791_v47, 0.0  ;;  %v813_v32 = vsel %vm811_vm0, %v791_v47, -inf }
 0x140   : > { %v782_v3 = vmax.f32 %v761_v61, 0.0  ;;  %v747_v6 = vadd.f32 %v726_v2, %v617_v1 }
 0x141   : > { %v643_v11 = vpop.permute.xlu1 %642 }
 0x142   : > { %v807_v58 = vmax.f32 %v782_v3, %v789_v39  ;;  %v827_v24 = vadd.f32 %v826_v34, %v782_v3  ;;  %v774_v57 = vadd.f32 %v1526_v49, %v747_v6  ;;  %v714_v4 = vmul.f32 %v1513_v54, %v643_v11 }
 0x144   : > { %v808_v55 = vmax.f32 %v807_v58, %v796_v52  ;;  %v795_v12 = vmax.f32 %v774_v57, 0.0  ;;  %v735_v42 = vadd.f32 %v714_v4, %v1495_v19 }
 0x145   : > { %v671_v43 = vpop.permute.xlu1 %670 }
 0x146   : > { %821 = vst [vmem:[%s1571_s13 + $0x20] sm:$0xff] %v808_v55  ;;  %v806_v48 = vmax.f32 %v805_v9, %v795_v12  ;;  %v852_v15 = vadd.f32 %v851_v56, %v795_v12  ;;  %v762_v60 = vadd.f32 %v1526_v49, %v735_v42  ;;  %v721_v13 = vmul.f32 %v1513_v54, %v671_v43 }
 0x147   : > { %v729_v56 = vmul.f32 %v1513_v54, %v703_v46 }
 0x148   : > { %820 = vst [vmem:[%s1571_s13 + $0x18] sm:$0xff] %v806_v48  ;;  %v783_v41 = vmax.f32 %v762_v60, 0.0  ;;  %v742_v18 = vadd.f32 %v721_v13, %v1500_v36  ;;  %v853_v17 = vadd.f32 %v852_v15, %v796_v52 }
 0x14a   : > { %v828_v38 = vadd.f32 %v827_v24, %v783_v41  ;;  %v769_v23 = vadd.f32 %v1526_v49, %v742_v18  ;;  %v573_v19 = vpop.permute.xlu1 %572 }
 0x14b   : > { %v599_v44 = vmul.f32 %v1482_v21, %v573_v19 }
 0x14c   : > { %v790_v7 = vmax.f32 %v769_v23, 0.0 }
 0x14d   : > { %v620_v26 = vadd.f32 %v599_v44, %v1478_v14 }
 0x14e   : > { %v809_v53 = vmax.f32 %v783_v41, %v790_v7  ;;  %v841_v50 = vadd.f32 %v840_v8, %v790_v7 }
 0x14f   : > { %v750_v36 = vadd.f32 %v729_v56, %v620_v26  ;;  %v647_v34 = vpop.permute.xlu1 %646 }
 0x150   : > { %v843_v0 = vadd.f32 %v842_v35, %v841_v50  ;;  %v715_v27 = vmul.f32 %v1513_v54, %v647_v34 }
 0x151   : > { %v777_v29 = vadd.f32 %v1526_v49, %v750_v36 }
 0x152   : > { %v844_v20 = vrot.slane %v843_v0, 4  ;;  %v736_v21 = vadd.f32 %v715_v27, %v1491_v28 }
 0x153   : > { %v699_v30 = vpop.permute.xlu1 %698  ;;  %v798_v40 = vmax.f32 %v777_v29, 0.0 }
 0x154   : > { %v845_v39 = vadd.f32 %v844_v20, %v843_v0  ;;  %v763_v9 = vadd.f32 %v1526_v49, %v736_v21  ;;  %v728_v14 = vmul.f32 %v1513_v54, %v699_v30 }
 0x155   : > { %v815_v62 = vsel %vm811_vm0, %v798_v40, -inf  ;;  %v855_v59 = vsel %vm811_vm0, %v798_v40, 0.0 }
 0x156   : > { %v784_v51 = vmax.f32 %v763_v9, 0.0  ;;  %v749_v33 = vadd.f32 %v728_v14, %v1515_v37  ;;  %v846_v22 = vrot.slane %v845_v39, 2 }
 0x158   : > { %v812_v8 = vsel %vm811_vm0, %v784_v51, -inf  ;;  %v829_v31 = vsel %vm811_vm0, %v784_v51, 0.0  ;;  %v776_v28 = vadd.f32 %v1526_v49, %v749_v33  ;;  %v847_v61 = vadd.f32 %v846_v22, %v845_v39 }
 0x159   : > { %v814_v16 = vmax.f32 %v812_v8, %v813_v32  ;;  %v830_v25 = vadd.f32 %v829_v31, %v828_v38 }
 0x15a   : > { %v797_v54 = vmax.f32 %v776_v28, 0.0  ;;  %v848_v49 = vrot.slane %v847_v61, 1 }
 0x15b   : > { %v816_v5 = vmax.f32 %v814_v16, %v815_v62  ;;  %v831_v1 = vrot.slane %v830_v25, 4 }
 0x15c   : > { %v810_v37 = vmax.f32 %v809_v53, %v797_v54  ;;  %v854_v2 = vadd.f32 %v853_v17, %v797_v54  ;;  %v849_v57 = vadd.f32 %v848_v49, %v847_v61 }
 0x15d   : > { %823 = vst [vmem:[%s1571_s13 + $0x30] sm:$0x1] %v816_v5  ;;  %v832_v3 = vadd.f32 %v831_v1, %v830_v25 }
 0x15e   : > { %822 = vst [vmem:[%s1571_s13 + $0x28] sm:$0xff] %v810_v37  ;;  %v856_v6 = vadd.f32 %v855_v59, %v854_v2  ;;  %v864_v42 = vmul.f32 0.020408163, %v849_v57 }
 0x15f   : > { %v833_v10 = vrot.slane %v832_v3, 2 }
 0x160   : > { %v857_v52 = vrot.slane %v856_v6, 4 }
 0x161   : > { %v834_v11 = vadd.f32 %v833_v10, %v832_v3 }
 0x162   : > { %v858_v58 = vadd.f32 %v857_v52, %v856_v6 }
 0x163   : > { %v835_v24 = vrot.slane %v834_v11, 1 }
 0x164   : > { %v859_v4 = vrot.slane %v858_v58, 2 }
 0x165   : > { %v836_v63 = vadd.f32 %v835_v24, %v834_v11 }
 0x166   : > { %v860_v55 = vadd.f32 %v859_v4, %v858_v58 }
 0x167   : > { %v863_v12 = vmul.f32 0.020408163, %v836_v63 }
 0x168   : > { %v861_v43 = vrot.slane %v860_v55, 1 }
 0x169   : > { %v866_v48 = vmax.f32 %v863_v12, %v864_v42 }
 0x16a   : > { %v862_v15 = vadd.f32 %v861_v43, %v860_v55 }
 0x16c   : > { %v865_v60 = vmul.f32 0.020408163, %v862_v15 }
 0x16e   : > { %v867_v13 = vmax.f32 %v866_v48, %v865_v60 }
 0x170   : > { %868 = vst [vmem:[%s197_s22] sm:$0x1] %v867_v13 }
 0x171   : > { %1052 = shalt.err (!%p1049_p3)
}
 0x172   : > { %s1053_s8 = scalar_lea.hbm %s1637_s29, 16  ;;  %s1057_s11 = scalar_lea.hbm %s1683_s4, 32 }
 0x173   : > { %p1054_p4 = scmp.ne.s32.totalorder %s1637_s29, %s1053_s8  ;;  %p1058_p9 = scmp.lt.u32.totalorder %s1637_s29, %s1683_s4 }
 0x174   : > { %p1059_p10 = scmp.lt.u32.totalorder %s1057_s11, %s1053_s8  ;;  %p1061_p12 = scmp.lt.u32.totalorder %s1053_s8, %s1637_s29 }
 0x175   : > { %p1055_p7 = pnand %p1054_p4, %p1171_p5 }
 0x176   : > { %p1060_p11 = por %p1059_p10, %p1058_p9 }
 0x177   : > { %p1056_p8 = pneg %p1055_p7 }
 0x178   : > { %p1062_p13 = por %p1061_p12, %p1060_p11 }
 0x17a   : > { %p1063_p0 = pnand %p1062_p13, %p1056_p8 }
 0x17c   : > { %1066 = shalt.err (!%p1063_p0)
}
 0x17d   : > { %982 = dma.vmem_to_hbm [thread:$0]  (%p1171_p5), %s1639_s23, 16, %s1637_s29, %s875_s30  }
 0x17e PF: > { %p988_p1 = scmp.ge.s32.totalorder %s1101_s18, 2  ;;  %s910_s14 = sand.u32 1, %s1089_s15  }
 0x17f   : > { %s911_s20 = scalar_lea.sflag [#allocation3], %s910_s14 }
 0x180   : > { %p985_p2 = pnand %p988_p1, %p1175_p6 }
 0x182   : > { %1084 = dma.done.wait (!%p985_p2), %s911_s20, 16  }
 0x183   : > { %1086 = vsyncadd (!%p985_p2), %s911_s20, 4294967280  ;;  %p15_p3 = scmp.ge.s32.totalorder %s1158_s21, 4   ;;  %s1686_s15 = smov %s1093_s16 }
 0x184   : > { %s1687_s16 = smov %s1097_s17  ;;  %s1688_s17 = smov %s1169_s24 }
 0x185   : > { %s1689_s18 = smov %s1158_s21  ;;  %17 = sbr.rel (!%p15_p3) target bundleno = 3 (0x3), region = 79 }
 0x18c   :  { %915 = vsyncpa [#allocation3], 1 }
 0x18d   :  { %917 = vsyncpa [#allocation3 + $0x1], 1 }

</bundles_post_ra>
